<compile_context>
chip_gen: v6e
topology: v6e:2x2x1
jax: 0.10.0
libtpu: 0.0.40
codegen_flags: <defaults>
</compile_context>

<pallas_src>
import jax
import jax.numpy as jnp
from jax import lax
from jax.experimental import pallas as pl
from jax.experimental.pallas import tpu as pltpu


def _banded_weight(w, W):
    """OIHW conv weight -> per-kernel-row banded matmul weights.

    w: (Cout, Cin, 3, 3).  Returns bw: (3, W*Cin, W*Cout) with
        bw[kh, j_in*Cin + c, j_out*Cout + o] = w[o, c, kh, j_in - j_out + 1]
    when |j_in - j_out| <= 1, else 0.  A matmul of a packed activation row
    band (H, W*Cin) with bw[kh] is exactly a width-3 'same' convolution along
    W (column halo folded into the clipped band), so the full 3x3 conv is the
    sum of 3 such matmuls (one per kh).
    """
    Cout, Cin = w.shape[0], w.shape[1]
    wt = jnp.transpose(w, (2, 3, 1, 0))                  # (kh, kw, Cin, Cout)
    P, Q = W * Cin, W * Cout
    j_in = jnp.arange(P) // Cin
    c_in = jnp.arange(P) % Cin
    j_out = jnp.arange(Q) // Cout
    c_out = jnp.arange(Q) % Cout
    kw = j_in[:, None] - j_out[None, :] + 1              # (P, Q)
    valid = (kw >= 0) & (kw <= 2)
    bw = wt[:, jnp.clip(kw, 0, 2), c_in[:, None], c_out[None, :]]  # (3, P, Q)
    return jnp.where(valid[None, :, :], bw, jnp.zeros_like(bw))


def _pick_batch_block(N, max_bn=8):
    """Largest bn <= max_bn dividing N that still leaves >= 2 grid steps
    (so each TensorCore keeps something to software-pipeline)."""
    best = 1
    for bn in range(1, min(max_bn, N) + 1):
        if N % bn == 0 and N // bn >= 2:
            best = bn
    return best


def _conv_up_kernel(x_ref, bw1_ref, b1_ref, bw2_ref, b2_ref, o_ref, y1pad_ref):
    # x_ref:     (bn, H+2, W*Cin)    f32  row-halo-padded, (W, C) packed on lanes
    # bw1_ref:   (3, W*Cin,  W*Cmid) bf16 banded conv1 weights
    # b1_ref:    (1, W*Cmid)         f32  bias tiled over W
    # bw2_ref:   (3, W*Cmid, W*Cout) bf16 banded conv2 weights
    # b2_ref:    (1, W*Cout)         f32
    # o_ref:     (bn, H, W*Cout)     f32  lane-dense output
    # y1pad_ref: (H+2, W*Cmid)       f32  scratch: conv1 output + row halo
    bn, H, WCout = o_ref.shape
    WCmid = bw1_ref.shape[2]

    # Zero only the two halo rows; the interior is fully overwritten for every
    # image.  Done unconditionally each step: pl.when(program_id(0) == 0)
    # would never fire on the second TensorCore under "parallel" sharding.
    zrow = jnp.zeros((1, WCmid), y1pad_ref.dtype)
    y1pad_ref[0:1, :] = zrow
    y1pad_ref[H + 1:H + 2, :] = zrow

    # Hoisted bias broadcasts (JAX does not CSE broadcast_in_dim).
    bias1 = jnp.broadcast_to(b1_ref[...], (H, WCmid)).astype(jnp.float32)
    bias2 = jnp.broadcast_to(b2_ref[...], (H, WCout)).astype(jnp.float32)

    for b in range(bn):                 # static unroll over the batch block
        # ---- Conv1: 3 banded MXU matmuls (one per kernel row), K = W*Cin.
        acc = bias1
        for kh in range(3):
            lhs = x_ref[b, kh:kh + H, :].astype(jnp.bfloat16)
            acc = acc + jnp.dot(lhs, bw1_ref[kh],
                                preferred_element_type=jnp.float32)
        # ReLU.  Dropout(p=0.3) is identity at inference.
        # TODO(synk): training-mode dropout would need pltpu.prng_seed /
        # pltpu.prng_random_bits masking and 1/(1-p) scaling here.
        y1pad_ref[1:H + 1, :] = jnp.maximum(acc, 0.0)

        # ---- Conv2: 3 banded MXU matmuls, K = W*Cmid, N = W*Cout (lane-dense).
        acc2 = bias2
        for kh in range(3):
            lhs = y1pad_ref[kh:kh + H, :].astype(jnp.bfloat16)
            acc2 = acc2 + jnp.dot(lhs, bw2_ref[kh],
                                  preferred_element_type=jnp.float32)
        o_ref[b] = jnp.maximum(acc2, 0.0).astype(o_ref.dtype)


def conv_up(x, w1, b1, w2, b2):
    """ConvUp forward (inference semantics).

    x:  (N, Cin, H, W) NCHW, Cin = input_dim + input_dim // 2
    w1: (Cmid, Cin, 3, 3), b1: (Cmid,)
    w2: (Cout, Cmid, 3, 3), b2: (Cout,)
    returns (N, Cout, 2H, 2W) NCHW.
    """
    N, Cin, H, W = x.shape
    Cmid = w1.shape[0]
    Cout = w2.shape[0]

    # One NCHW->NHWC conversion, zero-pad only the row halo, then pack (W, C)
    # onto the 128-lane axis: (N, H+2, W*Cin).
    x_nhwc = jnp.transpose(x, (0, 2, 3, 1))
    x_rowpad = jnp.pad(x_nhwc, ((0, 0), (1, 1), (0, 0), (0, 0)))
    x_pk = x_rowpad.reshape(N, H + 2, W * Cin).astype(jnp.float32)

    # Banded weights ('same' column padding folded in), bf16 for the MXU.
    bw1 = _banded_weight(w1, W).astype(jnp.bfloat16)     # (3, W*Cin,  W*Cmid)
    bw2 = _banded_weight(w2, W).astype(jnp.bfloat16)     # (3, W*Cmid, W*Cout)
    b1r = jnp.tile(b1, W).reshape(1, W * Cmid).astype(jnp.float32)
    b2r = jnp.tile(b2, W).reshape(1, W * Cout).astype(jnp.float32)

    bn = _pick_batch_block(N)
    grid = (N // bn,)

    flops = 2 * N * 3 * H * (W * Cin * W * Cmid + W * Cmid * W * Cout)
    bytes_accessed = (x_pk.size * 4 + bw1.size * 2 + bw2.size * 2
                      + b1r.size * 4 + b2r.size * 4 + N * H * W * Cout * 4)

    y = pl.pallas_call(
        _conv_up_kernel,
        out_shape=jax.ShapeDtypeStruct((N, H, W * Cout), jnp.float32),
        grid=grid,
        in_specs=[
            pl.BlockSpec((bn, H + 2, W * Cin), lambda n: (n, 0, 0)),
            pl.BlockSpec((3, W * Cin, W * Cmid), lambda n: (0, 0, 0)),
            pl.BlockSpec((1, W * Cmid), lambda n: (0, 0)),
            pl.BlockSpec((3, W * Cmid, W * Cout), lambda n: (0, 0, 0)),
            pl.BlockSpec((1, W * Cout), lambda n: (0, 0)),
        ],
        out_specs=pl.BlockSpec((bn, H, W * Cout), lambda n: (n, 0, 0)),
        scratch_shapes=[pltpu.VMEM((H + 2, W * Cmid), jnp.float32)],
        compiler_params=pltpu.CompilerParams(
            dimension_semantics=("parallel",)),
        cost_estimate=pl.CostEstimate(flops=flops, transcendentals=0,
                                      bytes_accessed=bytes_accessed),
    )(x_pk, bw1, b1r, bw2, b2r)

    # Nearest 2x upsample + NHWC->NCHW: pure layout ops, fused by XLA into a
    # single pass over the lane-dense kernel output.
    y = y.reshape(N, H, W, Cout)
    up = jnp.repeat(jnp.repeat(y, 2, axis=1), 2, axis=2)
    return jnp.transpose(up, (0, 3, 1, 2))


if __name__ == "__main__":
    # Shapes consistent with the module: input_dim=4, output_dim=8, batch=2,
    # spatial=16.  First conv consumes input_dim + input_dim // 2 = 6 channels.
    input_dim, output_dim = 4, 8
    N, H, W = 2, 16, 16
    Cin = input_dim + input_dim // 2          # 6
    Cmid = Cout = output_dim                  # 8

    key = jax.random.PRNGKey(0)
    kx, k1w, k1b, k2w, k2b = jax.random.split(key, 5)

    x = jax.random.normal(kx, (N, Cin, H, W), dtype=jnp.float32)

    def conv_init(kw_, kb_, cin, cout):
        fan_in = cin * 9
        bound = 1.0 / (fan_in ** 0.5)
        w = jax.random.uniform(kw_, (cout, cin, 3, 3),
                               minval=-bound, maxval=bound, dtype=jnp.float32)
        b = jax.random.uniform(kb_, (cout,),
                               minval=-bound, maxval=bound, dtype=jnp.float32)
        return w, b

    w1, b1 = conv_init(k1w, k1b, Cin, Cmid)
    w2, b2 = conv_init(k2w, k2b, Cmid, Cout)

    out = jax.block_until_ready(conv_up(x, w1, b1, w2, b2))
    assert out.shape == (N, Cout, 2 * H, 2 * W), out.shape

    # Reference check with XLA convs (inference semantics: dropout = identity).
    def ref_fn(x, w1, b1, w2, b2):
        y = lax.conv_general_dilated(
            x, w1, (1, 1), "SAME",
            dimension_numbers=("NCHW", "OIHW", "NCHW"))
        y = jnp.maximum(y + b1[None, :, None, None], 0.0)
        y = lax.conv_general_dilated(
            y, w2, (1, 1), "SAME",
            dimension_numbers=("NCHW", "OIHW", "NCHW"))
        y = jnp.maximum(y + b2[None, :, None, None], 0.0)
        return jnp.repeat(jnp.repeat(y, 2, axis=2), 2, axis=3)

    ref = ref_fn(x, w1, b1, w2, b2)
    # bf16 MXU operands with f32 accumulation (per perf review) -> loosened tol.
    assert jnp.allclose(out, ref, atol=5e-2, rtol=5e-2), \
        float(jnp.max(jnp.abs(out - ref)))

    print("KERNEL_OK")
</pallas_src>

<mosaic_0001>
module attributes {stable_mosaic.version = 11 : i64} {
  func.func @_conv_up_kernel(%arg0: i32, %arg1: memref<1x18x96xf32, #tpu.memory_space<vmem>>, %arg2: memref<3x96x128xbf16, #tpu.memory_space<vmem>>, %arg3: memref<1x128xf32, #tpu.memory_space<vmem>>, %arg4: memref<3x128x128xbf16, #tpu.memory_space<vmem>>, %arg5: memref<1x128xf32, #tpu.memory_space<vmem>>, %arg6: memref<1x16x128xf32, #tpu.memory_space<vmem>>, %arg7: memref<18x128xf32, #tpu.memory_space<vmem>>) attributes {dimension_semantics = [#tpu.dimension_semantics<parallel>], iteration_bounds = array<i64: 2>, scalar_prefetch = 0 : i64, scratch_operands = 1 : i64, tpu.core_type = #tpu.core_type<tc>, window_params = [{transform_indices = @transform_0, window_bounds = array<i64: 1, 18, 96>}, {pipeline_mode = #tpu.pipeline_mode<synchronous>, transform_indices = @transform_1, window_bounds = array<i64: 3, 96, 128>}, {pipeline_mode = #tpu.pipeline_mode<synchronous>, transform_indices = @transform_2, window_bounds = array<i64: 1, 128>}, {pipeline_mode = #tpu.pipeline_mode<synchronous>, transform_indices = @transform_3, window_bounds = array<i64: 3, 128, 128>}, {pipeline_mode = #tpu.pipeline_mode<synchronous>, transform_indices = @transform_4, window_bounds = array<i64: 1, 128>}, {transform_indices = @transform_5, window_bounds = array<i64: 1, 16, 128>}]} {
    %cst = arith.constant 0.000000e+00 : f32
    %0 = vector.broadcast %cst : f32 to vector<1x128xf32>
    %c0 = arith.constant 0 : index
    %c0_0 = arith.constant 0 : index
    %1 = vector.load %arg7[%c0, %c0_0] : memref<18x128xf32, #tpu.memory_space<vmem>>, vector<1x128xf32>
    tpu.vector_store %arg7[%c0, %c0_0], %0 {strides = array<i32>} : memref<18x128xf32, #tpu.memory_space<vmem>>, vector<1x128xf32>,
    %c17 = arith.constant 17 : index
    %c0_1 = arith.constant 0 : index
    %2 = vector.load %arg7[%c17, %c0_1] : memref<18x128xf32, #tpu.memory_space<vmem>>, vector<1x128xf32>
    tpu.vector_store %arg7[%c17, %c0_1], %0 {strides = array<i32>} : memref<18x128xf32, #tpu.memory_space<vmem>>, vector<1x128xf32>,
    %c0_2 = arith.constant 0 : index
    %c0_3 = arith.constant 0 : index
    %3 = vector.load %arg3[%c0_2, %c0_3] : memref<1x128xf32, #tpu.memory_space<vmem>>, vector<1x128xf32>
    %4 = vector.shape_cast %3 : vector<1x128xf32> to vector<1x128xf32>
    %5 = vector.broadcast %4 : vector<1x128xf32> to vector<16x128xf32>
    %c0_4 = arith.constant 0 : index
    %c0_5 = arith.constant 0 : index
    %6 = vector.load %arg5[%c0_4, %c0_5] : memref<1x128xf32, #tpu.memory_space<vmem>>, vector<1x128xf32>
    %7 = vector.shape_cast %6 : vector<1x128xf32> to vector<1x128xf32>
    %8 = vector.broadcast %7 : vector<1x128xf32> to vector<16x128xf32>
    %c0_6 = arith.constant 0 : index
    %c0_7 = arith.constant 0 : index
    %c0_8 = arith.constant 0 : index
    %9 = vector.load %arg1[%c0_6, %c0_7, %c0_8] : memref<1x18x96xf32, #tpu.memory_space<vmem>>, vector<1x16x96xf32>
    %10 = vector.shape_cast %9 : vector<1x16x96xf32> to vector<16x96xf32>
    %11 = arith.truncf %10 : vector<16x96xf32> to vector<16x96xbf16>
    %c0_9 = arith.constant 0 : index
    %c0_10 = arith.constant 0 : index
    %c0_11 = arith.constant 0 : index
    %12 = vector.load %arg2[%c0_9, %c0_10, %c0_11] : memref<3x96x128xbf16, #tpu.memory_space<vmem>>, vector<1x96x128xbf16>
    %13 = vector.shape_cast %12 : vector<1x96x128xbf16> to vector<96x128xbf16>
    %cst_12 = arith.constant dense<0.000000e+00> : vector<16x128xf32>
    %14 = tpu.matmul %11, %13, %cst_12 {dimension_numbers = #tpu.dot_dimension_numbers<[1], [0], [0], [1], [0, 0, 1, 1], [], []>} : vector<16x96xbf16>, vector<96x128xbf16>, vector<16x128xf32> -> vector<16x128xf32>
    %15 = arith.addf %5, %14 : vector<16x128xf32>
    %c0_13 = arith.constant 0 : index
    %c1 = arith.constant 1 : index
    %c0_14 = arith.constant 0 : index
    %16 = vector.load %arg1[%c0_13, %c1, %c0_14] : memref<1x18x96xf32, #tpu.memory_space<vmem>>, vector<1x16x96xf32>
    %17 = vector.shape_cast %16 : vector<1x16x96xf32> to vector<16x96xf32>
    %18 = arith.truncf %17 : vector<16x96xf32> to vector<16x96xbf16>
    %c1_15 = arith.constant 1 : index
    %c0_16 = arith.constant 0 : index
    %c0_17 = arith.constant 0 : index
    %19 = vector.load %arg2[%c1_15, %c0_16, %c0_17] : memref<3x96x128xbf16, #tpu.memory_space<vmem>>, vector<1x96x128xbf16>
    %20 = vector.shape_cast %19 : vector<1x96x128xbf16> to vector<96x128xbf16>
    %cst_18 = arith.constant dense<0.000000e+00> : vector<16x128xf32>
    %21 = tpu.matmul %18, %20, %cst_18 {dimension_numbers = #tpu.dot_dimension_numbers<[1], [0], [0], [1], [0, 0, 1, 1], [], []>} : vector<16x96xbf16>, vector<96x128xbf16>, vector<16x128xf32> -> vector<16x128xf32>
    %22 = arith.addf %15, %21 : vector<16x128xf32>
    %c0_19 = arith.constant 0 : index
    %c2 = arith.constant 2 : index
    %c0_20 = arith.constant 0 : index
    %23 = vector.load %arg1[%c0_19, %c2, %c0_20] : memref<1x18x96xf32, #tpu.memory_space<vmem>>, vector<1x16x96xf32>
    %24 = vector.shape_cast %23 : vector<1x16x96xf32> to vector<16x96xf32>
    %25 = arith.truncf %24 : vector<16x96xf32> to vector<16x96xbf16>
    %c2_21 = arith.constant 2 : index
    %c0_22 = arith.constant 0 : index
    %c0_23 = arith.constant 0 : index
    %26 = vector.load %arg2[%c2_21, %c0_22, %c0_23] : memref<3x96x128xbf16, #tpu.memory_space<vmem>>, vector<1x96x128xbf16>
    %27 = vector.shape_cast %26 : vector<1x96x128xbf16> to vector<96x128xbf16>
    %cst_24 = arith.constant dense<0.000000e+00> : vector<16x128xf32>
    %28 = tpu.matmul %25, %27, %cst_24 {dimension_numbers = #tpu.dot_dimension_numbers<[1], [0], [0], [1], [0, 0, 1, 1], [], []>} : vector<16x96xbf16>, vector<96x128xbf16>, vector<16x128xf32> -> vector<16x128xf32>
    %29 = arith.addf %22, %28 : vector<16x128xf32>
    %cst_25 = arith.constant 0.000000e+00 : f32
    %30 = vector.broadcast %cst_25 : f32 to vector<16x128xf32>
    %31 = arith.maximumf %29, %30 : vector<16x128xf32>
    %c1_26 = arith.constant 1 : index
    %c0_27 = arith.constant 0 : index
    %32 = vector.load %arg7[%c1_26, %c0_27] : memref<18x128xf32, #tpu.memory_space<vmem>>, vector<16x128xf32>
    tpu.vector_store %arg7[%c1_26, %c0_27], %31 {strides = array<i32>} : memref<18x128xf32, #tpu.memory_space<vmem>>, vector<16x128xf32>,
    %c0_28 = arith.constant 0 : index
    %c0_29 = arith.constant 0 : index
    %33 = vector.load %arg7[%c0_28, %c0_29] : memref<18x128xf32, #tpu.memory_space<vmem>>, vector<16x128xf32>
    %34 = arith.truncf %33 : vector<16x128xf32> to vector<16x128xbf16>
    %c0_30 = arith.constant 0 : index
    %c0_31 = arith.constant 0 : index
    %c0_32 = arith.constant 0 : index
    %35 = vector.load %arg4[%c0_30, %c0_31, %c0_32] : memref<3x128x128xbf16, #tpu.memory_space<vmem>>, vector<1x128x128xbf16>
    %36 = vector.shape_cast %35 : vector<1x128x128xbf16> to vector<128x128xbf16>
    %cst_33 = arith.constant dense<0.000000e+00> : vector<16x128xf32>
    %37 = tpu.matmul %34, %36, %cst_33 {dimension_numbers = #tpu.dot_dimension_numbers<[1], [0], [0], [1], [0, 0, 1, 1], [], []>} : vector<16x128xbf16>, vector<128x128xbf16>, vector<16x128xf32> -> vector<16x128xf32>
    %38 = arith.addf %8, %37 : vector<16x128xf32>
    %c1_34 = arith.constant 1 : index
    %c0_35 = arith.constant 0 : index
    %39 = vector.load %arg7[%c1_34, %c0_35] : memref<18x128xf32, #tpu.memory_space<vmem>>, vector<16x128xf32>
    %40 = arith.truncf %39 : vector<16x128xf32> to vector<16x128xbf16>
    %c1_36 = arith.constant 1 : index
    %c0_37 = arith.constant 0 : index
    %c0_38 = arith.constant 0 : index
    %41 = vector.load %arg4[%c1_36, %c0_37, %c0_38] : memref<3x128x128xbf16, #tpu.memory_space<vmem>>, vector<1x128x128xbf16>
    %42 = vector.shape_cast %41 : vector<1x128x128xbf16> to vector<128x128xbf16>
    %cst_39 = arith.constant dense<0.000000e+00> : vector<16x128xf32>
    %43 = tpu.matmul %40, %42, %cst_39 {dimension_numbers = #tpu.dot_dimension_numbers<[1], [0], [0], [1], [0, 0, 1, 1], [], []>} : vector<16x128xbf16>, vector<128x128xbf16>, vector<16x128xf32> -> vector<16x128xf32>
    %44 = arith.addf %38, %43 : vector<16x128xf32>
    %c2_40 = arith.constant 2 : index
    %c0_41 = arith.constant 0 : index
    %45 = vector.load %arg7[%c2_40, %c0_41] : memref<18x128xf32, #tpu.memory_space<vmem>>, vector<16x128xf32>
    %46 = arith.truncf %45 : vector<16x128xf32> to vector<16x128xbf16>
    %c2_42 = arith.constant 2 : index
    %c0_43 = arith.constant 0 : index
    %c0_44 = arith.constant 0 : index
    %47 = vector.load %arg4[%c2_42, %c0_43, %c0_44] : memref<3x128x128xbf16, #tpu.memory_space<vmem>>, vector<1x128x128xbf16>
    %48 = vector.shape_cast %47 : vector<1x128x128xbf16> to vector<128x128xbf16>
    %cst_45 = arith.constant dense<0.000000e+00> : vector<16x128xf32>
    %49 = tpu.matmul %46, %48, %cst_45 {dimension_numbers = #tpu.dot_dimension_numbers<[1], [0], [0], [1], [0, 0, 1, 1], [], []>} : vector<16x128xbf16>, vector<128x128xbf16>, vector<16x128xf32> -> vector<16x128xf32>
    %50 = arith.addf %44, %49 : vector<16x128xf32>
    %cst_46 = arith.constant 0.000000e+00 : f32
    %51 = vector.broadcast %cst_46 : f32 to vector<16x128xf32>
    %52 = arith.maximumf %50, %51 : vector<16x128xf32>
    %c0_47 = arith.constant 0 : index
    %c0_48 = arith.constant 0 : index
    %c0_49 = arith.constant 0 : index
    %53 = vector.load %arg6[%c0_47, %c0_48, %c0_49] : memref<1x16x128xf32, #tpu.memory_space<vmem>>, vector<1x16x128xf32>
    %54 = vector.shape_cast %53 : vector<1x16x128xf32> to vector<16x128xf32>
    %55 = vector.shape_cast %52 : vector<16x128xf32> to vector<1x16x128xf32>
    tpu.vector_store %arg6[%c0_47, %c0_48, %c0_49], %55 {strides = array<i32>} : memref<1x16x128xf32, #tpu.memory_space<vmem>>, vector<1x16x128xf32>,
    return
  }
  func.func @transform_0(%arg0: i32) -> (i32, i32, i32) {
    %c0_i32 = arith.constant 0 : i32
    %c0_i32_0 = arith.constant 0 : i32
    %c0_i32_1 = arith.constant 0 : i32
    return %arg0, %c0_i32, %c0_i32_0 : i32, i32, i32
  }
  func.func @transform_1(%arg0: i32) -> (i32, i32, i32) {
    %c0_i32 = arith.constant 0 : i32
    %c0_i32_0 = arith.constant 0 : i32
    %c0_i32_1 = arith.constant 0 : i32
    %c0_i32_2 = arith.constant 0 : i32
    return %c0_i32, %c0_i32_0, %c0_i32_1 : i32, i32, i32
  }
  func.func @transform_2(%arg0: i32) -> (i32, i32) {
    %c0_i32 = arith.constant 0 : i32
    %c0_i32_0 = arith.constant 0 : i32
    %c0_i32_1 = arith.constant 0 : i32
    return %c0_i32, %c0_i32_0 : i32, i32
  }
  func.func @transform_3(%arg0: i32) -> (i32, i32, i32) {
    %c0_i32 = arith.constant 0 : i32
    %c0_i32_0 = arith.constant 0 : i32
    %c0_i32_1 = arith.constant 0 : i32
    %c0_i32_2 = arith.constant 0 : i32
    return %c0_i32, %c0_i32_0, %c0_i32_1 : i32, i32, i32
  }
  func.func @transform_4(%arg0: i32) -> (i32, i32) {
    %c0_i32 = arith.constant 0 : i32
    %c0_i32_0 = arith.constant 0 : i32
    %c0_i32_1 = arith.constant 0 : i32
    return %c0_i32, %c0_i32_0 : i32, i32
  }
  func.func @transform_5(%arg0: i32) -> (i32, i32, i32) {
    %c0_i32 = arith.constant 0 : i32
    %c0_i32_0 = arith.constant 0 : i32
    %c0_i32_1 = arith.constant 0 : i32
    return %arg0, %c0_i32, %c0_i32_0 : i32, i32, i32
  }
}

</mosaic_0001>

<bundles_post_ra>
// kernel: tpu_custom_call.1
= control target key start
LH: loop header
LB: loop body
LE: loop exit
PB: predicated region body
PF: predicated region fallthrough
CT: control target
= control target key end

     0   :  { %10 = vsyncpa [#allocation4], 0  ;;  %s1707_s0 = inlined_call_operand.vmem [shape: f32[2,18,96], index: 0, kind: input, shape index: {}]   ;;  %s1708_s1 = inlined_call_operand.hbm [shape: bf16[3,96,128], index: 1, kind: input, shape index: {}]   ;;  %s1709_s2 = inlined_call_operand.vmem [shape: f32[1,128], index: 2, kind: input, shape index: {}]   ;;  %s1710_s3 = inlined_call_operand.hbm [shape: bf16[3,128,128], index: 3, kind: input, shape index: {}]   ;;  %s1711_s4 = inlined_call_operand.vmem [shape: f32[1,128], index: 4, kind: input, shape index: {}]   ;;  %s1712_s5 = inlined_call_operand.hbm [shape: f32[2,16,128], index: 5, kind: output, shape index: {}]  }
   0x1   :  { %11 = vsyncpa [#allocation7], 0 }
   0x2   :  { %12 = vsyncpa [#allocation5], 0 }
   0x3   :  { %14 = vsyncpa [#allocation5 + $0x1], 0  ;;  %s1491_s18 = smov 0   ;;  %s1493_s19 = smov 0  }
   0x4   :  { %s1495_s20 = smov 0   ;;  %s1497_s21 = smov 0  }
   0x5 LB: > { %s1512_s22 = sadd.s32 4294967295, %s1450_s21   ;;  %s1002_s23 = sadd.s32 4294967294, %s1450_s21   ;;  %s1450_s21 = sphi %s1497_s21, %s1726_s21   ;;  %s1446_s20 = sphi %s1495_s20, %s1725_s20   ;;  %s1442_s19 = sphi %s1493_s19, %s1724_s19   ;;  %s1438_s18 = sphi %s1491_s18, %s1723_s18  }
   0x6   : > { %s1516_s24 = sadd.s32 1, %s1450_s21   ;;  %s137_s25 = sadd.s32 1, %s1446_s20 }
   0x7   : > { %s134_s26 = ssub.s32 %s1450_s21, %s1516_s24  ;;  %p147_p0 = scmp.ne.s32.totalorder %s1446_s20, %s1442_s19 }
   0x8   : > { %p135_p1 = scmp.eq.s32.totalorder %s134_s26, 0  ;;  %p148_p2 = scmp.eq.s32.totalorder %s1512_s22, 1 }
   0x9   : > { %p153_p3 = scmp.ne.s32.totalorder %s1442_s19, %s1438_s18  ;;  %p154_p4 = scmp.eq.s32.totalorder %s1002_s23, 1 }
   0xa   : > { %s1527_s27 = scalar_select %p135_p1, %s1446_s20, %s137_s25  }
   0xb   : > { %p1529_p5 = por %p148_p2, %p147_p0  ;;  %p1533_p6 = por %p154_p4, %p153_p3 }
   0xc   : > { %p1003_p7 = scmp.ge.s32.totalorder %s1450_s21, 1  ;;  %p161_p8 = scmp.lt.s32.totalorder %s1450_s21, 3 }
   0xd   : > { %s1715_s29 = scalar_select %p1533_p6, 1, 0 }
   0xe   : > { %p1713_p9 = scmp.eq.s32.totalorder %s1512_s22, 0  ;;  %p1540_p10 = pnand %p1003_p7, %p161_p8 }
   0xf   : > { %s1452_s6 = smov [#allocation3]   ;;  %s1453_s9 = smov [#allocation6]  }
  0x10   : > { %s173_s7 = sshll.u32 %s1452_s6, 4  ;;  %p1232_p11 = pneg %p1540_p10  ;;  %s174_s7 = int_to_ptr.vmem [resolvable:$true] %s173_s7 }
  0x11   : > { %s189_s10 = sshll.u32 %s1453_s9, 4  ;;  %s1341_s11 = scalar_lea.vmem %s174_s7, 2304  ;;  %s190_s10 = int_to_ptr.vmem [resolvable:$true] %s189_s10 }
  0x12   : > { %p1548_p12 = pnand %p1713_p9, %p1232_p11  ;;  %p1342_p0 = scmp.ne.s32.totalorder %s174_s7, %s1341_s11 }
  0x13   : > { %p1349_p3 = scmp.lt.s32.totalorder %s174_s7, %s174_s7  ;;  %p1350_p4 = scmp.lt.s32.totalorder %s1341_s11, %s1341_s11 }
  0x14   : > { %p1332_p13 = pneg %p1548_p12 }
  0x15   : > { %p1351_p7 = por %p1350_p4, %p1349_p3 }
  0x16   : > { %p1344_p1 = pnand %p1342_p0, %p1332_p13 }
  0x18   : > { %p1345_p2 = pneg %p1344_p1 }
  0x1a   : > { %p1352_p8 = pnand %p1351_p7, %p1345_p2 }
  0x1c   : > { %1355 = shalt.err (!%p1352_p8)
}
  0x1d   : > { %s1454_s12 = smov 64   ;;  %s1455_s13 = smov 4  }
  0x1e   : > { %1235 = dma.hbm_to_vmem [thread:$0]  (!%p1548_p12), %s1708_s1, 2304, %s174_s7, [#allocation4], %s1454_s12, %s1454_s12, %s1455_s13  }
  0x1f   : > { %s1367_s16 = scalar_lea.vmem %s190_s10, 3072  ;;  %p1375_p9 = scmp.lt.s32.totalorder %s190_s10, %s190_s10 }
  0x20   : > { %p1368_p11 = scmp.ne.s32.totalorder %s190_s10, %s1367_s16  ;;  %p1376_p6 = scmp.lt.s32.totalorder %s1367_s16, %s1367_s16 }
  0x22   : > { %p1370_p0 = pnand %p1368_p11, %p1332_p13  ;;  %p1377_p3 = por %p1376_p6, %p1375_p9 }
  0x24   : > { %p1371_p1 = pneg %p1370_p0 }
  0x26   : > { %p1378_p2 = pnand %p1377_p3, %p1371_p1 }
  0x28   : > { %1381 = shalt.err (!%p1378_p2)
}
  0x29   : > { %1238 = dma.hbm_to_vmem [thread:$0]  (!%p1548_p12), %s1710_s3, 3072, %s190_s10, [#allocation7], %s1454_s12, %s1454_s12, %s1455_s13  }
  0x2a   : > { %216 = sbr.rel (%p1540_p10) target bundleno = 559 (0x22f), region = 40  ;;  %p1718_p4 = scmp.eq.s32.totalorder (!%p1540_p10), %s1512_s22, 0 }
  0x2f   : > { %1425 = dma.done.wait (%p1718_p4), [#allocation4], 2304   ;;  %p1719_p13 = pmov %p1718_p4 }
  0x30   : > { %p1720_p7 = pmov %p1718_p4 }
  0x31   : > { %1427 = vsyncadd (%p1719_p13), [#allocation4], 4294964992 }
  0x32   : > { %1429 = dma.done.wait (%p1720_p7), [#allocation7], 3072   ;;  %p1721_p6 = pmov %p1718_p4 }
  0x33   : > { %v1456_v0 = vmov 0.0   ;;  %vm1457_vm0 = vmmov 0   ;;  %v1288_v1 = vld [vmem:[#allocation3 + $0x28] sm:$0xff]   ;;  %v1289_v2 = vld [vmem:[#allocation3 + $0x58] sm:$0xff]   ;;  %v1290_v3 = vld [vmem:[#allocation3 + $0x20] sm:$0xff]   ;;  %p248_p9 = scmp.lt.s32.totalorder %s1512_s22, 1 }
  0x34   : > { %1431 = vsyncadd (%p1721_p6), [#allocation7], 4294964224  ;;  %1113 = vmatprep.subr.bf16.mxu0 %v1456_v0  ;;  %254 = vst [vmem:[#allocation2] sm:$0x1] %v1456_v0  ;;  %1129 = vmatprep.subr.bf16.mxu1 %v1456_v0  ;;  %v1291_v4 = vld [vmem:[#allocation3 + $0x50] sm:$0xff]   ;;  %v1292_v5 = vld [vmem:[#allocation3 + $0x18] sm:$0xff]  }
  0x35   : > { %255 = vst [vmem:[#allocation2 + $0x11] sm:$0x1] %v1456_v0  ;;  %1125 = vmatprep.mubr.msk.bf16.mxu0 %vm1457_vm0, %v1456_v0  ;;  %1141 = vmatprep.mubr.msk.bf16.mxu1 %vm1457_vm0, %v1456_v0  ;;  %s249_s25 = scalar_select %p248_p9, %s1512_s22, 1  ;;  %v1293_v6 = vld [vmem:[#allocation3 + $0x48] sm:$0xff]   ;;  %v1294_v7 = vld [vmem:[#allocation3 + $0x10] sm:$0xff]   ;;  %v1295_v8 = vld [vmem:[#allocation3 + $0x40] sm:$0xff]  }
  0x36   : > { %1114 = vmatpush3.bf16.msra.mxu0 %v1288_v1  ;;  %1130 = vmatpush3.bf16.msra.mxu1 %v1289_v2  ;;  %v1296_v9 = vld [vmem:[#allocation3 + $0x8] sm:$0xff]   ;;  %v1297_v10 = vld [vmem:[#allocation3 + $0x38] sm:$0xff]   ;;  %v1298_v11 = vld [vmem:[#allocation3] sm:$0xff]   ;;  %vm321_vm1 = vcmask 785408   ;;  %s245_s12 = sand.u32 1, %s1442_s19   ;;  %s1064_s16 = sshll.u32 %s1512_s22, 8 }
  0x37   : > { %1115 = vmatprep.subr.bf16.mxu0 %v1456_v0  ;;  %1131 = vmatprep.subr.bf16.mxu1 %v1456_v0  ;;  %s1221_s26 = smul.u32 24, %s249_s25  ;;  %v1299_v14 = vld [vmem:[#allocation3 + $0x30] sm:$0xff]   ;;  %v1300_v17 = vld [vmem:[#allocation3 + $0x88] sm:$0xff]   ;;  %v1301_v20 = vld [vmem:[#allocation3 + $0x80] sm:$0xff]   ;;  %s1010_s13 = sshll.u32 %s245_s12, 4 }
  0x38   : > { %v1302_v21 = vld [vmem:[#allocation3 + $0x78] sm:$0xff]   ;;  %v1303_v22 = vld [vmem:[#allocation3 + $0x70] sm:$0xff]   ;;  %v1304_v23 = vld [vmem:[#allocation3 + $0x68] sm:$0xff]   ;;  %s247_s14 = scalar_lea.vmem [#allocation8], %s1010_s13  ;;  %s1665_s25 = scalar_lea.hbm %s1712_s5, %s1064_s16 }
  0x39   : > { %s1599_s7 = scalar_lea.vmem %s1707_s0, %s1221_s26  ;;  %v1305_v24 = vld [vmem:[#allocation3 + $0x60] sm:$0xff]   ;;  %v1307_v28 = vld [vmem:[#allocation6 + $0x78] sm:$0xff]   ;;  %v1311_v31 = vld [vmem:[#allocation6 + $0x68] sm:$0xff]   ;;  %s918_s15 = sshll.u32 %s247_s14, 4  ;;  %s1660_s15 = int_to_ptr.vmem [resolvable:$true] %s918_s15 }
  0x3a   : > { %1116 = vmatpush3.bf16.msra.mxu0 %v1290_v3  ;;  %1132 = vmatpush3.bf16.msra.mxu1 %v1291_v4  ;;  %v270_v12 = vld [vmem:[%s1599_s7] sm:$0xff]  ;;  %v271_v13 = vld [vmem:[%s1599_s7 + $0x8] sm:$0xff]  ;;  %v1309_v29 = vld [vmem:[#allocation6 + $0x70] sm:$0xff]   ;;  %s1667_s26 = scalar_lea.sflag [#allocation5], %s245_s12  ;;  %s1382_s30 = scalar_lea.vmem %s1660_s15, 256 }
  0x3b   : > { %1117 = vmatprep.subr.bf16.mxu0 %v1456_v0  ;;  %1133 = vmatprep.subr.bf16.mxu1 %v1456_v0  ;;  %v368_v15 = vld [vmem:[%s1599_s7 + $0x1] sm:$0xff]  ;;  %v369_v16 = vld [vmem:[%s1599_s7 + $0x9] sm:$0xff]  ;;  %v272_v18 = vpack.c.bf16 %v271_v13, %v270_v12  ;;  %v1308_v32 = vld [vmem:[#allocation6 + $0x30] sm:$0xff]   ;;  %p1383_p10 = scmp.ne.s32.totalorder %s1660_s15, %s1382_s30  ;;  %s1458_s22 = smov [#allocation8]  }
  0x3c   : > { %v370_v19 = vpack.c.bf16 %v369_v16, %v368_v15  ;;  %v466_v25 = vld [vmem:[%s1599_s7 + $0x2] sm:$0xff]  ;;  %v467_v26 = vld [vmem:[%s1599_s7 + $0xa] sm:$0xff]  ;;  %v1317_v37 = vld [vmem:[#allocation6 + $0x50] sm:$0xff]   ;;  %s1386_s6 = sshll.u32 %s1458_s22, 4  ;;  %s1387_s6 = int_to_ptr.vmem [resolvable:$false] %s1386_s6 }
  0x3d   : > { %v468_v27 = vpack.c.bf16 %v467_v26, %v466_v25  ;;  %v1306_v30 = vld [vmem:[#allocation6 + $0x38] sm:$0xff]   ;;  %v1310_v33 = vld [vmem:[#allocation6 + $0x28] sm:$0xff]   ;;  %v1313_v34 = vld [vmem:[#allocation6 + $0x60] sm:$0xff]   ;;  %p1384_p12 = pnand %p1383_p10, %p1529_p5  ;;  %s1388_s7 = scalar_lea.vmem %s1387_s6, 512 }
  0x3e   : > { %1118 = vmatpush3.bf16.msra.mxu0 %v1292_v5  ;;  %1134 = vmatpush3.bf16.msra.mxu1 %v1293_v6  ;;  %v1312_v35 = vld [vmem:[#allocation6 + $0x20] sm:$0xff]   ;;  %v1315_v36 = vld [vmem:[#allocation6 + $0x58] sm:$0xff]   ;;  %v1319_v39 = vld [vmem:[#allocation6 + $0x48] sm:$0xff]   ;;  %p1389_p11 = scmp.lt.s32.totalorder %s1660_s15, %s1387_s6  ;;  %p1390_p0 = scmp.lt.s32.totalorder %s1388_s7, %s1382_s30 }
  0x3f   : > { %1119 = vmatprep.subr.bf16.mxu0 %v1456_v0  ;;  %1135 = vmatprep.subr.bf16.mxu1 %v1456_v0  ;;  %v1314_v38 = vld [vmem:[#allocation6 + $0x18] sm:$0xff]   ;;  %v1316_v40 = vld [vmem:[#allocation6 + $0x10] sm:$0xff]   ;;  %v1321_v41 = vld [vmem:[#allocation6 + $0x40] sm:$0xff]   ;;  %p1385_p8 = pneg %p1384_p12 }
  0x40   : > { %v1318_v42 = vld [vmem:[#allocation6 + $0x8] sm:$0xff]   ;;  %v1320_v43 = vld [vmem:[#allocation6] sm:$0xff]   ;;  %v1012_v52 = vld [vmem:[%s1709_s2] ss:$0 sm:$0xff]  ;;  %p1391_p1 = por %p1390_p0, %p1389_p11 }
  0x41   : > { %v1322_v5 = vld [vmem:[#allocation6 + $0xb8] sm:$0xff]   ;;  %v1328_v12 = vld [vmem:[#allocation6 + $0x88] sm:$0xff]   ;;  %v1329_v13 = vld [vmem:[#allocation6 + $0x80] sm:$0xff]  }
  0x42   : > { %1120 = vmatpush3.bf16.msra.mxu0 %v1294_v7  ;;  %1136 = vmatpush3.bf16.msra.mxu1 %v1295_v8  ;;  %v1323_v7 = vld [vmem:[#allocation6 + $0xb0] sm:$0xff]   ;;  %v1324_v8 = vld [vmem:[#allocation6 + $0xa8] sm:$0xff]   ;;  %v1013_v25 = vld [vmem:[%s1711_s4] ss:$0 sm:$0xff]  ;;  %p1392_p3 = pnand %p1391_p1, %p1385_p8 }
  0x43   : > { %1121 = vmatprep.subr.bf16.mxu0 %v1456_v0  ;;  %1137 = vmatprep.subr.bf16.mxu1 %v1456_v0 }
  0x46   : > { %1122 = vmatpush3.bf16.msra.mxu0 %v1296_v9  ;;  %1138 = vmatpush3.bf16.msra.mxu1 %v1297_v10  ;;  %v1325_v9 = vld [vmem:[#allocation6 + $0xa0] sm:$0xff]   ;;  %v1326_v10 = vld [vmem:[#allocation6 + $0x98] sm:$0xff]  }
  0x47   : > { %1123 = vmatprep.subr.bf16.mxu0 %v1456_v0  ;;  %1139 = vmatprep.subr.bf16.mxu1 %v1456_v0 }
  0x4a   : > { %1124 = vmatpush3.bf16.msra.mxu0 %v1298_v11  ;;  %1140 = vmatpush3.bf16.msra.mxu1 %v1299_v14  ;;  %v1327_v11 = vld [vmem:[#allocation6 + $0x90] sm:$0xff]  }
  0x4b   : > { %1145 = vmatprep.subr.bf16.mxu0 %v1456_v0  ;;  %1161 = vmatprep.subr.bf16.mxu1 %v1456_v0 }
  0x4d   : > { %1126 = vmatmul.mubr.msk.bf16.vlgmr.msra.gmra.mxu0 %vm321_vm1, %v272_v18  ;;  %1142 = vmatmul.mubr.msk.bf16.vlgmr.msra.gmra.mxu1 %vm321_vm1, %v370_v19 }
  0x4e   : > { %1146 = vmatpush3.bf16.msra.mxu0 %v1300_v17  ;;  %1157 = vmatprep.mubr.msk.bf16.mxu0 %vm1457_vm0, %v1456_v0 }
  0x4f   : > { %1147 = vmatprep.subr.bf16.mxu0 %v1456_v0  ;;  %1177 = vmatprep.mubr.msk.bf16.mxu1 %vm1457_vm0, %v1456_v0 }
  0x50   : > { %1162 = vmatpush3.bf16.msra.mxu1 %v1306_v30 }
  0x51   : > { %1163 = vmatprep.subr.bf16.mxu1 %v1456_v0 }
  0x52   : > { %1148 = vmatpush3.bf16.msra.mxu0 %v1301_v20 }
  0x53   : > { %1149 = vmatprep.subr.bf16.mxu0 %v1456_v0 }
  0x54   : > { %1164 = vmatpush3.bf16.msra.mxu1 %v1308_v32 }
  0x55   : > { %1165 = vmatprep.subr.bf16.mxu1 %v1456_v0 }
  0x56   : > { %1150 = vmatpush3.bf16.msra.mxu0 %v1302_v21 }
  0x57   : > { %1151 = vmatprep.subr.bf16.mxu0 %v1456_v0 }
  0x58   : > { %1166 = vmatpush3.bf16.msra.mxu1 %v1310_v33 }
  0x59   : > { %1167 = vmatprep.subr.bf16.mxu1 %v1456_v0 }
  0x5a   : > { %1152 = vmatpush3.bf16.msra.mxu0 %v1303_v22 }
  0x5b   : > { %1153 = vmatprep.subr.bf16.mxu0 %v1456_v0 }
  0x5c   : > { %1168 = vmatpush3.bf16.msra.mxu1 %v1312_v35 }
  0x5d   : > { %1169 = vmatprep.subr.bf16.mxu1 %v1456_v0 }
  0x5e   : > { %1154 = vmatpush3.bf16.msra.mxu0 %v1304_v23 }
  0x5f   : > { %1155 = vmatprep.subr.bf16.mxu0 %v1456_v0 }
  0x60   : > { %1170 = vmatpush3.bf16.msra.mxu1 %v1314_v38 }
  0x61   : > { %1171 = vmatprep.subr.bf16.mxu1 %v1456_v0 }
  0x62   : > { %1156 = vmatpush3.bf16.msra.mxu0 %v1305_v24 }
  0x63   : > { %1181 = vmatprep.subr.bf16.mxu0 %v1456_v0 }
  0x64   : > { %1172 = vmatpush3.bf16.msra.mxu1 %v1316_v40 }
  0x65   : > { %1158 = vmatmul.mubr.msk.bf16.vlgmr.msra.gmra.mxu0 %vm321_vm1, %v468_v27  ;;  %1173 = vmatprep.subr.bf16.mxu1 %v1456_v0 }
  0x66   : > { %1197 = vmatprep.mubr.msk.bf16.mxu0 %vm1457_vm0, %v1456_v0  ;;  %1182 = vmatpush3.bf16.msra.mxu0 %v1307_v28 }
  0x67   : > { %1183 = vmatprep.subr.bf16.mxu0 %v1456_v0 }
  0x68   : > { %1174 = vmatpush3.bf16.msra.mxu1 %v1318_v42 }
  0x69   : > { %1175 = vmatprep.subr.bf16.mxu1 %v1456_v0 }
  0x6a   : > { %1184 = vmatpush3.bf16.msra.mxu0 %v1309_v29 }
  0x6b   : > { %1185 = vmatprep.subr.bf16.mxu0 %v1456_v0 }
  0x6c   : > { %1176 = vmatpush3.bf16.msra.mxu1 %v1320_v43 }
  0x6d   : > { %1201 = vmatprep.subr.bf16.mxu1 %v1456_v0 }
  0x6e   : > { %1186 = vmatpush3.bf16.msra.mxu0 %v1311_v31 }
  0x6f   : > { %1187 = vmatprep.subr.bf16.mxu0 %v1456_v0 }
  0x72   : > { %1188 = vmatpush3.bf16.msra.mxu0 %v1313_v34 }
  0x73   : > { %1189 = vmatprep.subr.bf16.mxu0 %v1456_v0 }
  0x76   : > { %1190 = vmatpush3.bf16.msra.mxu0 %v1315_v36 }
  0x77   : > { %1191 = vmatprep.subr.bf16.mxu0 %v1456_v0 }
  0x7a   : > { %1192 = vmatpush3.bf16.msra.mxu0 %v1317_v37 }
  0x7b   : > { %1193 = vmatprep.subr.bf16.mxu0 %v1456_v0 }
  0x7e   : > { %1194 = vmatpush3.bf16.msra.mxu0 %v1319_v39 }
  0x7f   : > { %1195 = vmatprep.subr.bf16.mxu0 %v1456_v0 }
  0x82   : > { %1196 = vmatpush3.bf16.msra.mxu0 %v1321_v41 }
 0x10d   : > { %v359_v44 = vpop.f32.mrf.mxu0  ;;  %v457_v45 = vpop.f32.mrf.mxu1 }
 0x10e   : > { %v366_v53 = vadd.f32 %v1012_v52, %v359_v44 }
 0x10f   : > { %v1127_v46 = vpop.f32.mrf.mxu0  ;;  %v1143_v47 = vpop.f32.mrf.mxu1 }
 0x110   : > { %v464_v54 = vadd.f32 %v457_v45, %v366_v53 }
 0x111   : > { %v362_v48 = vpop.f32.mrf.mxu0  ;;  %v460_v49 = vpop.f32.mrf.mxu1 }
 0x112   : > { %v367_v55 = vadd.f32 %v1012_v52, %v362_v48 }
 0x113   : > { %v1128_v50 = vpop.f32.mrf.mxu0  ;;  %v1144_v51 = vpop.f32.mrf.mxu1 }
 0x114   : > { %v465_v59 = vadd.f32 %v460_v49, %v367_v55 }
 0x125   : > { %v555_v56 = vpop.f32.mrf.mxu0 }
 0x126   : > { %v562_v57 = vadd.f32 %v555_v56, %v464_v54 }
 0x127   : > { %v1159_v58 = vpop.f32.mrf.mxu0 }
 0x128   : > { %v564_v60 = vmax.f32 %v562_v57, 0.0 }
 0x129   : > { %v558_v61 = vpop.f32.mrf.mxu0 }
 0x12a   : > { %566 = vst [vmem:[#allocation2 + $0x1] sm:$0xff] %v564_v60  ;;  %v563_v62 = vadd.f32 %v558_v61, %v465_v59 }
 0x12b   : > { %v1160_v63 = vpop.f32.mrf.mxu0 }
 0x12c   : > { %v565_v1 = vmax.f32 %v563_v62, 0.0 }
 0x12e   : > { %567 = vst [vmem:[#allocation2 + $0x9] sm:$0xff] %v565_v1  ;;  %v680_v2 = vpack.c.bf16 %v565_v1, %v564_v60 }
 0x130   : > { %1198 = vmatmul.mubr.bf16.vlgmr.msra.gmra.mxu0 %v680_v2 }
 0x131   : > { %v568_v3 = vld [vmem:[#allocation2] sm:$0xff] }
 0x135   : > { %v569_v4 = vld [vmem:[#allocation2 + $0x8] sm:$0xff] }
 0x136   : > { %v570_v6 = vpack.c.bf16 %v569_v4, %v568_v3  ;;  %v789_v14 = vld [vmem:[#allocation2 + $0x2] sm:$0xff]  ;;  %v790_v15 = vld [vmem:[#allocation2 + $0xa] sm:$0xff] }
 0x137   : > { %v791_v16 = vpack.c.bf16 %v790_v15, %v789_v14 }
 0x138   : > { %1178 = vmatmul.mubr.bf16.vlgmr.msra.gmra.mxu1 %v570_v6 }
 0x139   : > { %1202 = vmatpush3.bf16.msra.mxu1 %v1322_v5  ;;  %1217 = vmatprep.mubr.msk.bf16.mxu1 %vm1457_vm0, %v1456_v0 }
 0x13a   : > { %1203 = vmatprep.subr.bf16.mxu1 %v1456_v0 }
 0x13d   : > { %1204 = vmatpush3.bf16.msra.mxu1 %v1323_v7 }
 0x13e   : > { %1205 = vmatprep.subr.bf16.mxu1 %v1456_v0 }
 0x141   : > { %1206 = vmatpush3.bf16.msra.mxu1 %v1324_v8 }
 0x142   : > { %1207 = vmatprep.subr.bf16.mxu1 %v1456_v0 }
 0x145   : > { %1208 = vmatpush3.bf16.msra.mxu1 %v1325_v9 }
 0x146   : > { %1209 = vmatprep.subr.bf16.mxu1 %v1456_v0 }
 0x149   : > { %1210 = vmatpush3.bf16.msra.mxu1 %v1326_v10 }
 0x14a   : > { %1211 = vmatprep.subr.bf16.mxu1 %v1456_v0 }
 0x14d   : > { %1212 = vmatpush3.bf16.msra.mxu1 %v1327_v11 }
 0x14e   : > { %1213 = vmatprep.subr.bf16.mxu1 %v1456_v0 }
 0x151   : > { %1214 = vmatpush3.bf16.msra.mxu1 %v1328_v12 }
 0x152   : > { %1215 = vmatprep.subr.bf16.mxu1 %v1456_v0 }
 0x155   : > { %1216 = vmatpush3.bf16.msra.mxu1 %v1329_v13 }
 0x158   : > { %1218 = vmatmul.mubr.bf16.vlgmr.msra.gmra.mxu1 %v791_v16 }
 0x1f0   : > { %v780_v17 = vpop.f32.mrf.mxu0 }
 0x1f2   : > { %v1199_v18 = vpop.f32.mrf.mxu0 }
 0x1f4   : > { %v783_v19 = vpop.f32.mrf.mxu0 }
 0x1f6   : > { %v1200_v20 = vpop.f32.mrf.mxu0 }
 0x1f8   : > { %v669_v21 = vpop.f32.mrf.mxu1 }
 0x1f9   : > { %v676_v0 = vadd.f32 %v1013_v25, %v669_v21 }
 0x1fa   : > { %v1179_v22 = vpop.f32.mrf.mxu1 }
 0x1fb   : > { %v787_v26 = vadd.f32 %v780_v17, %v676_v0 }
 0x1fc   : > { %v672_v23 = vpop.f32.mrf.mxu1 }
 0x1fd   : > { %v677_v27 = vadd.f32 %v1013_v25, %v672_v23 }
 0x1fe   : > { %v1180_v24 = vpop.f32.mrf.mxu1 }
 0x1ff   : > { %v788_v31 = vadd.f32 %v783_v19, %v677_v27 }
 0x218   : > { %v891_v28 = vpop.f32.mrf.mxu1 }
 0x219   : > { %v898_v29 = vadd.f32 %v891_v28, %v787_v26 }
 0x21a   : > { %v1219_v30 = vpop.f32.mrf.mxu1 }
 0x21b   : > { %v900_v32 = vmax.f32 %v898_v29, 0.0 }
 0x21c   : > { %v894_v33 = vpop.f32.mrf.mxu1 }
 0x21d   : > { %902 = vst [vmem:[%s247_s14] sm:$0xff] %v900_v32  ;;  %v899_v34 = vadd.f32 %v894_v33, %v788_v31 }
 0x21e   : > { %v1220_v35 = vpop.f32.mrf.mxu1 }
 0x21f   : > { %v901_v36 = vmax.f32 %v899_v34, 0.0 }
 0x221   : > { %903 = vst [vmem:[%s247_s14 + $0x8] sm:$0xff] %v901_v36 }
 0x222   : > { %1395 = shalt.err (!%p1392_p3)
}
 0x223   : > { %s1396_s8 = scalar_lea.hbm %s1665_s25, 256  ;;  %s1400_s11 = scalar_lea.hbm %s1712_s5, 512 }
 0x224   : > { %p1397_p2 = scmp.ne.s32.totalorder %s1665_s25, %s1396_s8  ;;  %p1401_p7 = scmp.lt.s32.totalorder %s1665_s25, %s1712_s5 }
 0x225   : > { %p1402_p6 = scmp.lt.s32.totalorder %s1400_s11, %s1396_s8 }
 0x226   : > { %p1398_p4 = pnand %p1397_p2, %p1529_p5 }
 0x227   : > { %p1403_p9 = por %p1402_p6, %p1401_p7 }
 0x228   : > { %p1399_p13 = pneg %p1398_p4 }
 0x22a   : > { %p1404_p10 = pnand %p1403_p9, %p1399_p13 }
 0x22c   : > { %1407 = shalt.err (!%p1404_p10)
}
 0x22d   : > { %s1459_s14 = smov 128   ;;  %s1460_s16 = smov 8  }
 0x22e   : > { %1230 = dma.vmem_to_hbm [thread:$0]  (%p1529_p5), %s1660_s15, 256, %s1665_s25, %s1667_s26, %s1459_s14, %s1459_s14, %s1460_s16  }
 0x22f PF: > { %p1247_p12 = scmp.ge.s32.totalorder %s1450_s21, 2  ;;  %s933_s17 = sand.u32 1, %s1438_s18  }
 0x230   : > { %p1722_p8 = scmp.ne.s32.totalorder %s1715_s29, 0  ;;  %s934_s23 = scalar_lea.sflag [#allocation5], %s933_s17 }
 0x232   : > { %p1240_p11 = pnand %p1247_p12, %p1722_p8 }
 0x234   : > { %p1241_p0 = pneg %p1240_p11 }
 0x236   : > { %1433 = dma.done.wait (%p1241_p0), %s934_s23, 256  }
 0x237   : > { %1435 = vsyncadd (%p1241_p0), %s934_s23, 4294967040  ;;  %p17_p1 = scmp.ge.s32.totalorder %s1516_s24, 4   ;;  %s1723_s18 = smov %s1442_s19 }
 0x238   : > { %s1724_s19 = smov %s1446_s20  ;;  %s1725_s20 = smov %s1527_s27 }
 0x239   : > { %s1726_s21 = smov %s1516_s24  ;;  %19 = sbr.rel (!%p17_p1) target bundleno = 5 (0x5), region = 88 }
 0x23e   :  { %939 = vsyncpa [#allocation4], 1 }
 0x23f   :  { %941 = vsyncpa [#allocation4 + $0x1], 1 }
 0x240   :  { %942 = vsyncpa [#allocation7], 1 }
 0x241   :  { %943 = vsyncpa [#allocation5], 1 }
 0x242   :  { %945 = vsyncpa [#allocation5 + $0x1], 1 }

</bundles_post_ra>
